<compile_context>
chip_gen: v7x
topology: tpu7x:2x2x1
jax: 0.10.0
libtpu: 0.0.40
codegen_flags: <defaults>
</compile_context>

<pallas_src>
import functools

import jax
import jax.numpy as jnp
from jax import lax
from jax.experimental import pallas as pl
from jax.experimental.pallas import tpu as pltpu

# ---------------------------------------------------------------------------
# Static geometry implied by the module (fc1 expects 256 = 16 * 4 * 4 features):
#   12x12 input -> conv 3x3 -> 10x10 -> maxpool(3,3,s=2) -> 4x4
# ---------------------------------------------------------------------------
CIN, COUT = 3, 16
KH = KW = 3
IMG = 12
OH = OW = IMG - KH + 1            # 10
PH = PW = (OH - 3) // 2 + 1       # 4
PATCH = CIN * KH * KW             # 27
NPOS = OH * OW                    # 100
HID = 16
FEAT = COUT * PH * PW             # 256
NCLS = 2
NCLS_PAD = 8                      # fc2 rows padded to one sublane tile
MAX_TB = 128                      # images per grid step (VMEM-safe on v5e/v6e/v7x)


# ------------------------------ fused kernel --------------------------------

def fused_net_kernel(p_ref, wc_ref, bc_ref, w1_ref, b1_ref, w2_ref, b2_ref,
                     o_ref, *, TB):
    """Whole forward pass for TB images per grid step; batch lives on the lane axis.

    p_ref : [27, TB*100]  im2col patches, lane = conv_position * TB + image
    wc_ref: [16, 27]      conv weight (same tap order as the patches)
    bc_ref: [256, 1]      conv bias replicated per pooled position (row = pos*16 + c)
    w1_ref: [16, 256]     fc1 weight, columns ordered (ph, pw, c) to match `pooled`
    b1_ref: [16, 1]       fc1 bias
    w2_ref: [8, 16]       fc2 weight padded to 8 rows (rows 2..7 are zero)
    b2_ref: [8, 1]        fc2 bias padded to 8 rows
    o_ref : [2, TB]       logits, batch on lanes
    """
    # Conv2d(3,16,3) for all TB images at once: one wide MXU matmul.
    conv = jnp.dot(wc_ref[...], p_ref[...],
                   preferred_element_type=jnp.float32)            # [16, TB*100]

    # MaxPool((3,3), stride=2): only the 16 pooled windows are needed.  Each conv
    # position is a contiguous [16, TB] lane slab, so every window is a max over 9
    # aligned slices (pure VPU work).  Max referenced position is 88 < 100, so no
    # cross-image access is possible.
    blocks = []
    for ph in range(PH):
        for pw in range(PW):
            base = (2 * ph) * OW + 2 * pw                          # window top-left
            m = conv[:, base * TB:(base + 1) * TB]
            for dr in range(3):
                for dc in range(3):
                    if dr == 0 and dc == 0:
                        continue
                    col = base + dr * OW + dc
                    m = jnp.maximum(m, conv[:, col * TB:(col + 1) * TB])
            blocks.append(m)                                       # [16, TB]
    pooled = jnp.concatenate(blocks, axis=0)                       # [256, TB]

    # Conv bias and ReLU commute with the per-channel max -> apply on the small
    # pooled tile.  Dropout2d(p=0.25) is identity at inference time.
    # TODO(synk): training-mode Dropout2d (per-channel Bernoulli mask) not implemented.
    pooled = jnp.maximum(pooled + bc_ref[...], 0.0)                # [256, TB]

    # fc1 + ReLU, then fc2 — both MXU matmuls with the batch on the lane axis.
    h = jnp.dot(w1_ref[...], pooled, preferred_element_type=jnp.float32) + b1_ref[...]
    h = jnp.maximum(h, 0.0)                                        # [16, TB]
    logits = jnp.dot(w2_ref[...], h, preferred_element_type=jnp.float32) + b2_ref[...]
    o_ref[...] = logits[:NCLS, :]                                  # [2, TB]


# ----------------------------- pallas_call wrapper ---------------------------

def fused_net(p_flat, wc_mat, bc256, w1t, b1_col, w2p, b2p, *, tb, steps):
    kernel = functools.partial(fused_net_kernel, TB=tb)
    return pl.pallas_call(
        kernel,
        grid=(steps,),
        in_specs=[
            pl.BlockSpec((PATCH, tb * NPOS), lambda g: (0, g)),
            pl.BlockSpec((COUT, PATCH), lambda g: (0, 0)),
            pl.BlockSpec((FEAT, 1), lambda g: (0, 0)),
            pl.BlockSpec((HID, FEAT), lambda g: (0, 0)),
            pl.BlockSpec((HID, 1), lambda g: (0, 0)),
            pl.BlockSpec((NCLS_PAD, HID), lambda g: (0, 0)),
            pl.BlockSpec((NCLS_PAD, 1), lambda g: (0, 0)),
        ],
        out_specs=pl.BlockSpec((NCLS, tb), lambda g: (0, g)),
        out_shape=jax.ShapeDtypeStruct((NCLS, steps * tb), jnp.float32),
        compiler_params=pltpu.CompilerParams(dimension_semantics=("parallel",)),
    )(p_flat, wc_mat, bc256, w1t, b1_col, w2p, b2p)


# --------------------------- parameter preparation ---------------------------

def prepare_params(params):
    """One-time re-layout of the PyTorch parameters (run once, outside the jit)."""
    wc, bc, w1, b1, w2, b2 = params
    # Flatten each 3x3x3 filter with the *same* patch-extraction op used on the
    # activations, so the im2col tap order matches by construction.
    wc_mat = lax.conv_general_dilated_patches(
        wc, filter_shape=(KH, KW), window_strides=(1, 1), padding='VALID',
        dimension_numbers=('NCHW', 'OIHW', 'NCHW')).reshape(COUT, PATCH)   # [16, 27]
    # Conv bias replicated per pooled position (row order = pos*16 + c): it is added
    # after the max (a per-channel constant commutes with the window max).
    bc256 = jnp.tile(bc.reshape(1, COUT), (PH * PW, 1)).reshape(FEAT, 1)   # [256, 1]
    # Fold PyTorch's (c, h, w) view(-1, 256) order into fc1: columns -> (h, w, c).
    w1t = jnp.transpose(w1.reshape(HID, COUT, PH, PW),
                        (0, 2, 3, 1)).reshape(HID, FEAT)                   # [16, 256]
    # Pad fc2 to a full sublane tile (8 output rows); extra rows are zero.
    w2p = jnp.zeros((NCLS_PAD, HID), jnp.float32).at[:NCLS].set(w2)        # [8, 16]
    b2p = jnp.zeros((NCLS_PAD, 1), jnp.float32).at[:NCLS, 0].set(b2)       # [8, 1]
    return (wc_mat, bc256, w1t, b1.reshape(HID, 1), w2p, b2p)


# ------------------------------- forward pass --------------------------------

def net_forward(x, prep):
    """x: [B, 3, 12, 12] (NCHW, PyTorch convention). prep: output of prepare_params."""
    B = x.shape[0]
    wc_mat, bc256, w1t, b1_col, w2p, b2p = prep

    # Single fused XLA op builds the im2col patches: [B, 27, 10, 10] -> [B, 27, 100].
    patches = lax.conv_general_dilated_patches(
        x, filter_shape=(KH, KW), window_strides=(1, 1), padding='VALID',
        dimension_numbers=('NCHW', 'OIHW', 'NCHW')).reshape(B, PATCH, NPOS)

    # Tile/pad the batch: TB images per grid step.
    tb = B if B <= MAX_TB else MAX_TB
    steps = pl.cdiv(B, tb)
    b_pad = steps * tb
    if b_pad != B:
        patches = jnp.pad(patches, ((0, b_pad - B), (0, 0), (0, 0)))

    # Lane-major re-layout: [B_pad, 27, 100] -> [27, steps * 100 * tb] with
    # global column = g*(100*tb) + position*tb + image_within_block.
    p_flat = (patches.reshape(steps, tb, PATCH, NPOS)
              .transpose(2, 0, 3, 1)
              .reshape(PATCH, b_pad * NPOS))

    logits = fused_net(p_flat, wc_mat, bc256, w1t, b1_col, w2p, b2p,
                       tb=tb, steps=steps)                          # [2, B_pad]
    return logits[:, :B].T                                          # [B, 2]


# ------------------------------ pure-JAX reference ---------------------------

def net_reference(x, params):
    wc, bc, w1, b1, w2, b2 = params
    y = lax.conv_general_dilated(x, wc, (1, 1), 'VALID',
                                 dimension_numbers=('NCHW', 'OIHW', 'NCHW'),
                                 precision=lax.Precision.HIGHEST)
    y = y + bc.reshape(1, COUT, 1, 1)
    y = lax.reduce_window(y, -jnp.inf, lax.max,
                          (1, 1, 3, 3), (1, 1, 2, 2), 'VALID')
    y = jnp.maximum(y, 0.0).reshape(-1, FEAT)
    y = jnp.maximum(jnp.dot(y, w1.T, precision=lax.Precision.HIGHEST) + b1, 0.0)
    return jnp.dot(y, w2.T, precision=lax.Precision.HIGHEST) + b2


if __name__ == "__main__":
    key = jax.random.PRNGKey(0)
    kx, k1, k2, k3, k4, k5, k6 = jax.random.split(key, 7)

    B = 2
    # spatial 12x12 so that conv(3x3) -> 10x10, pool(3x3,s=2) -> 4x4, 16*4*4 = 256
    x = jax.random.normal(kx, (B, CIN, IMG, IMG), dtype=jnp.float32)

    wc = 0.1 * jax.random.normal(k1, (COUT, CIN, KH, KW), dtype=jnp.float32)  # Conv2d(3,16,3)
    bc = 0.1 * jax.random.normal(k2, (COUT,), dtype=jnp.float32)
    w1 = 0.1 * jax.random.normal(k3, (HID, FEAT), dtype=jnp.float32)          # Linear(256,16)
    b1 = 0.1 * jax.random.normal(k4, (HID,), dtype=jnp.float32)
    w2 = 0.1 * jax.random.normal(k5, (NCLS, HID), dtype=jnp.float32)          # Linear(16,2)
    b2 = 0.1 * jax.random.normal(k6, (NCLS,), dtype=jnp.float32)
    params = (wc, bc, w1, b1, w2, b2)

    prep = prepare_params(params)                 # one-time weight re-layout
    fwd = jax.jit(net_forward)

    # Small-batch check (single grid step, block dims == full dims).
    out = jax.block_until_ready(fwd(x, prep))
    ref = net_reference(x, params)
    assert out.shape == (B, NCLS)
    assert jnp.allclose(out, ref, atol=1e-3, rtol=1e-3)

    # Larger-batch check: exercises the padded, multi-step (TB=128, lane-aligned) path.
    B2 = 200
    x2 = jax.random.normal(jax.random.PRNGKey(1), (B2, CIN, IMG, IMG), dtype=jnp.float32)
    out2 = jax.block_until_ready(fwd(x2, prep))
    ref2 = net_reference(x2, params)
    assert out2.shape == (B2, NCLS)
    assert jnp.allclose(out2, ref2, atol=1e-3, rtol=1e-3)

    print("KERNEL_OK")
</pallas_src>

<mosaic_0001>
module attributes {stable_mosaic.version = 11 : i64} {
  func.func @fused_net_kernel(%arg0: i32, %arg1: memref<27x200xf32, #tpu.memory_space<vmem>>, %arg2: memref<16x27xf32, #tpu.memory_space<vmem>>, %arg3: memref<256x1xf32, #tpu.memory_space<vmem>>, %arg4: memref<16x256xf32, #tpu.memory_space<vmem>>, %arg5: memref<16x1xf32, #tpu.memory_space<vmem>>, %arg6: memref<8x16xf32, #tpu.memory_space<vmem>>, %arg7: memref<8x1xf32, #tpu.memory_space<vmem>>, %arg8: memref<2x2xf32, #tpu.memory_space<vmem>>) attributes {dimension_semantics = [#tpu.dimension_semantics<parallel>], iteration_bounds = array<i64: 1>, scalar_prefetch = 0 : i64, scratch_operands = 0 : i64, tpu.core_type = #tpu.core_type<tc>, window_params = [{transform_indices = @transform_0, window_bounds = array<i64: 27, 200>}, {pipeline_mode = #tpu.pipeline_mode<synchronous>, transform_indices = @transform_1, window_bounds = array<i64: 16, 27>}, {pipeline_mode = #tpu.pipeline_mode<synchronous>, transform_indices = @transform_2, window_bounds = array<i64: 256, 1>}, {pipeline_mode = #tpu.pipeline_mode<synchronous>, transform_indices = @transform_3, window_bounds = array<i64: 16, 256>}, {pipeline_mode = #tpu.pipeline_mode<synchronous>, transform_indices = @transform_4, window_bounds = array<i64: 16, 1>}, {pipeline_mode = #tpu.pipeline_mode<synchronous>, transform_indices = @transform_5, window_bounds = array<i64: 8, 16>}, {pipeline_mode = #tpu.pipeline_mode<synchronous>, transform_indices = @transform_6, window_bounds = array<i64: 8, 1>}, {transform_indices = @transform_7, window_bounds = array<i64: 2, 2>}]} {
    %c0 = arith.constant 0 : index
    %c0_0 = arith.constant 0 : index
    %0 = vector.load %arg2[%c0, %c0_0] : memref<16x27xf32, #tpu.memory_space<vmem>>, vector<16x27xf32>
    %c0_1 = arith.constant 0 : index
    %c0_2 = arith.constant 0 : index
    %1 = vector.load %arg1[%c0_1, %c0_2] : memref<27x200xf32, #tpu.memory_space<vmem>>, vector<27x200xf32>
    %cst = arith.constant dense<0.000000e+00> : vector<16x200xf32>
    %2 = tpu.matmul %0, %1, %cst {dimension_numbers = #tpu.dot_dimension_numbers<[1], [0], [0], [1], [0, 0, 1, 1], [], []>} : vector<16x27xf32>, vector<27x200xf32>, vector<16x200xf32> -> vector<16x200xf32>
    %3 = vector.extract_strided_slice %2 {offsets = [0, 0], sizes = [16, 2], strides = [1, 1]} : vector<16x200xf32> to vector<16x2xf32>
    %4 = vector.extract_strided_slice %2 {offsets = [0, 2], sizes = [16, 2], strides = [1, 1]} : vector<16x200xf32> to vector<16x2xf32>
    %5 = arith.maximumf %3, %4 : vector<16x2xf32>
    %6 = vector.extract_strided_slice %2 {offsets = [0, 4], sizes = [16, 2], strides = [1, 1]} : vector<16x200xf32> to vector<16x2xf32>
    %7 = arith.maximumf %5, %6 : vector<16x2xf32>
    %8 = vector.extract_strided_slice %2 {offsets = [0, 20], sizes = [16, 2], strides = [1, 1]} : vector<16x200xf32> to vector<16x2xf32>
    %9 = arith.maximumf %7, %8 : vector<16x2xf32>
    %10 = vector.extract_strided_slice %2 {offsets = [0, 22], sizes = [16, 2], strides = [1, 1]} : vector<16x200xf32> to vector<16x2xf32>
    %11 = arith.maximumf %9, %10 : vector<16x2xf32>
    %12 = vector.extract_strided_slice %2 {offsets = [0, 24], sizes = [16, 2], strides = [1, 1]} : vector<16x200xf32> to vector<16x2xf32>
    %13 = arith.maximumf %11, %12 : vector<16x2xf32>
    %14 = vector.extract_strided_slice %2 {offsets = [0, 40], sizes = [16, 2], strides = [1, 1]} : vector<16x200xf32> to vector<16x2xf32>
    %15 = arith.maximumf %13, %14 : vector<16x2xf32>
    %16 = vector.extract_strided_slice %2 {offsets = [0, 42], sizes = [16, 2], strides = [1, 1]} : vector<16x200xf32> to vector<16x2xf32>
    %17 = arith.maximumf %15, %16 : vector<16x2xf32>
    %18 = vector.extract_strided_slice %2 {offsets = [0, 44], sizes = [16, 2], strides = [1, 1]} : vector<16x200xf32> to vector<16x2xf32>
    %19 = arith.maximumf %17, %18 : vector<16x2xf32>
    %20 = vector.extract_strided_slice %2 {offsets = [0, 4], sizes = [16, 2], strides = [1, 1]} : vector<16x200xf32> to vector<16x2xf32>
    %21 = vector.extract_strided_slice %2 {offsets = [0, 6], sizes = [16, 2], strides = [1, 1]} : vector<16x200xf32> to vector<16x2xf32>
    %22 = arith.maximumf %20, %21 : vector<16x2xf32>
    %23 = vector.extract_strided_slice %2 {offsets = [0, 8], sizes = [16, 2], strides = [1, 1]} : vector<16x200xf32> to vector<16x2xf32>
    %24 = arith.maximumf %22, %23 : vector<16x2xf32>
    %25 = vector.extract_strided_slice %2 {offsets = [0, 24], sizes = [16, 2], strides = [1, 1]} : vector<16x200xf32> to vector<16x2xf32>
    %26 = arith.maximumf %24, %25 : vector<16x2xf32>
    %27 = vector.extract_strided_slice %2 {offsets = [0, 26], sizes = [16, 2], strides = [1, 1]} : vector<16x200xf32> to vector<16x2xf32>
    %28 = arith.maximumf %26, %27 : vector<16x2xf32>
    %29 = vector.extract_strided_slice %2 {offsets = [0, 28], sizes = [16, 2], strides = [1, 1]} : vector<16x200xf32> to vector<16x2xf32>
    %30 = arith.maximumf %28, %29 : vector<16x2xf32>
    %31 = vector.extract_strided_slice %2 {offsets = [0, 44], sizes = [16, 2], strides = [1, 1]} : vector<16x200xf32> to vector<16x2xf32>
    %32 = arith.maximumf %30, %31 : vector<16x2xf32>
    %33 = vector.extract_strided_slice %2 {offsets = [0, 46], sizes = [16, 2], strides = [1, 1]} : vector<16x200xf32> to vector<16x2xf32>
    %34 = arith.maximumf %32, %33 : vector<16x2xf32>
    %35 = vector.extract_strided_slice %2 {offsets = [0, 48], sizes = [16, 2], strides = [1, 1]} : vector<16x200xf32> to vector<16x2xf32>
    %36 = arith.maximumf %34, %35 : vector<16x2xf32>
    %37 = vector.extract_strided_slice %2 {offsets = [0, 8], sizes = [16, 2], strides = [1, 1]} : vector<16x200xf32> to vector<16x2xf32>
    %38 = vector.extract_strided_slice %2 {offsets = [0, 10], sizes = [16, 2], strides = [1, 1]} : vector<16x200xf32> to vector<16x2xf32>
    %39 = arith.maximumf %37, %38 : vector<16x2xf32>
    %40 = vector.extract_strided_slice %2 {offsets = [0, 12], sizes = [16, 2], strides = [1, 1]} : vector<16x200xf32> to vector<16x2xf32>
    %41 = arith.maximumf %39, %40 : vector<16x2xf32>
    %42 = vector.extract_strided_slice %2 {offsets = [0, 28], sizes = [16, 2], strides = [1, 1]} : vector<16x200xf32> to vector<16x2xf32>
    %43 = arith.maximumf %41, %42 : vector<16x2xf32>
    %44 = vector.extract_strided_slice %2 {offsets = [0, 30], sizes = [16, 2], strides = [1, 1]} : vector<16x200xf32> to vector<16x2xf32>
    %45 = arith.maximumf %43, %44 : vector<16x2xf32>
    %46 = vector.extract_strided_slice %2 {offsets = [0, 32], sizes = [16, 2], strides = [1, 1]} : vector<16x200xf32> to vector<16x2xf32>
    %47 = arith.maximumf %45, %46 : vector<16x2xf32>
    %48 = vector.extract_strided_slice %2 {offsets = [0, 48], sizes = [16, 2], strides = [1, 1]} : vector<16x200xf32> to vector<16x2xf32>
    %49 = arith.maximumf %47, %48 : vector<16x2xf32>
    %50 = vector.extract_strided_slice %2 {offsets = [0, 50], sizes = [16, 2], strides = [1, 1]} : vector<16x200xf32> to vector<16x2xf32>
    %51 = arith.maximumf %49, %50 : vector<16x2xf32>
    %52 = vector.extract_strided_slice %2 {offsets = [0, 52], sizes = [16, 2], strides = [1, 1]} : vector<16x200xf32> to vector<16x2xf32>
    %53 = arith.maximumf %51, %52 : vector<16x2xf32>
    %54 = vector.extract_strided_slice %2 {offsets = [0, 12], sizes = [16, 2], strides = [1, 1]} : vector<16x200xf32> to vector<16x2xf32>
    %55 = vector.extract_strided_slice %2 {offsets = [0, 14], sizes = [16, 2], strides = [1, 1]} : vector<16x200xf32> to vector<16x2xf32>
    %56 = arith.maximumf %54, %55 : vector<16x2xf32>
    %57 = vector.extract_strided_slice %2 {offsets = [0, 16], sizes = [16, 2], strides = [1, 1]} : vector<16x200xf32> to vector<16x2xf32>
    %58 = arith.maximumf %56, %57 : vector<16x2xf32>
    %59 = vector.extract_strided_slice %2 {offsets = [0, 32], sizes = [16, 2], strides = [1, 1]} : vector<16x200xf32> to vector<16x2xf32>
    %60 = arith.maximumf %58, %59 : vector<16x2xf32>
    %61 = vector.extract_strided_slice %2 {offsets = [0, 34], sizes = [16, 2], strides = [1, 1]} : vector<16x200xf32> to vector<16x2xf32>
    %62 = arith.maximumf %60, %61 : vector<16x2xf32>
    %63 = vector.extract_strided_slice %2 {offsets = [0, 36], sizes = [16, 2], strides = [1, 1]} : vector<16x200xf32> to vector<16x2xf32>
    %64 = arith.maximumf %62, %63 : vector<16x2xf32>
    %65 = vector.extract_strided_slice %2 {offsets = [0, 52], sizes = [16, 2], strides = [1, 1]} : vector<16x200xf32> to vector<16x2xf32>
    %66 = arith.maximumf %64, %65 : vector<16x2xf32>
    %67 = vector.extract_strided_slice %2 {offsets = [0, 54], sizes = [16, 2], strides = [1, 1]} : vector<16x200xf32> to vector<16x2xf32>
    %68 = arith.maximumf %66, %67 : vector<16x2xf32>
    %69 = vector.extract_strided_slice %2 {offsets = [0, 56], sizes = [16, 2], strides = [1, 1]} : vector<16x200xf32> to vector<16x2xf32>
    %70 = arith.maximumf %68, %69 : vector<16x2xf32>
    %71 = vector.extract_strided_slice %2 {offsets = [0, 40], sizes = [16, 2], strides = [1, 1]} : vector<16x200xf32> to vector<16x2xf32>
    %72 = vector.extract_strided_slice %2 {offsets = [0, 42], sizes = [16, 2], strides = [1, 1]} : vector<16x200xf32> to vector<16x2xf32>
    %73 = arith.maximumf %71, %72 : vector<16x2xf32>
    %74 = vector.extract_strided_slice %2 {offsets = [0, 44], sizes = [16, 2], strides = [1, 1]} : vector<16x200xf32> to vector<16x2xf32>
    %75 = arith.maximumf %73, %74 : vector<16x2xf32>
    %76 = vector.extract_strided_slice %2 {offsets = [0, 60], sizes = [16, 2], strides = [1, 1]} : vector<16x200xf32> to vector<16x2xf32>
    %77 = arith.maximumf %75, %76 : vector<16x2xf32>
    %78 = vector.extract_strided_slice %2 {offsets = [0, 62], sizes = [16, 2], strides = [1, 1]} : vector<16x200xf32> to vector<16x2xf32>
    %79 = arith.maximumf %77, %78 : vector<16x2xf32>
    %80 = vector.extract_strided_slice %2 {offsets = [0, 64], sizes = [16, 2], strides = [1, 1]} : vector<16x200xf32> to vector<16x2xf32>
    %81 = arith.maximumf %79, %80 : vector<16x2xf32>
    %82 = vector.extract_strided_slice %2 {offsets = [0, 80], sizes = [16, 2], strides = [1, 1]} : vector<16x200xf32> to vector<16x2xf32>
    %83 = arith.maximumf %81, %82 : vector<16x2xf32>
    %84 = vector.extract_strided_slice %2 {offsets = [0, 82], sizes = [16, 2], strides = [1, 1]} : vector<16x200xf32> to vector<16x2xf32>
    %85 = arith.maximumf %83, %84 : vector<16x2xf32>
    %86 = vector.extract_strided_slice %2 {offsets = [0, 84], sizes = [16, 2], strides = [1, 1]} : vector<16x200xf32> to vector<16x2xf32>
    %87 = arith.maximumf %85, %86 : vector<16x2xf32>
    %88 = vector.extract_strided_slice %2 {offsets = [0, 44], sizes = [16, 2], strides = [1, 1]} : vector<16x200xf32> to vector<16x2xf32>
    %89 = vector.extract_strided_slice %2 {offsets = [0, 46], sizes = [16, 2], strides = [1, 1]} : vector<16x200xf32> to vector<16x2xf32>
    %90 = arith.maximumf %88, %89 : vector<16x2xf32>
    %91 = vector.extract_strided_slice %2 {offsets = [0, 48], sizes = [16, 2], strides = [1, 1]} : vector<16x200xf32> to vector<16x2xf32>
    %92 = arith.maximumf %90, %91 : vector<16x2xf32>
    %93 = vector.extract_strided_slice %2 {offsets = [0, 64], sizes = [16, 2], strides = [1, 1]} : vector<16x200xf32> to vector<16x2xf32>
    %94 = arith.maximumf %92, %93 : vector<16x2xf32>
    %95 = vector.extract_strided_slice %2 {offsets = [0, 66], sizes = [16, 2], strides = [1, 1]} : vector<16x200xf32> to vector<16x2xf32>
    %96 = arith.maximumf %94, %95 : vector<16x2xf32>
    %97 = vector.extract_strided_slice %2 {offsets = [0, 68], sizes = [16, 2], strides = [1, 1]} : vector<16x200xf32> to vector<16x2xf32>
    %98 = arith.maximumf %96, %97 : vector<16x2xf32>
    %99 = vector.extract_strided_slice %2 {offsets = [0, 84], sizes = [16, 2], strides = [1, 1]} : vector<16x200xf32> to vector<16x2xf32>
    %100 = arith.maximumf %98, %99 : vector<16x2xf32>
    %101 = vector.extract_strided_slice %2 {offsets = [0, 86], sizes = [16, 2], strides = [1, 1]} : vector<16x200xf32> to vector<16x2xf32>
    %102 = arith.maximumf %100, %101 : vector<16x2xf32>
    %103 = vector.extract_strided_slice %2 {offsets = [0, 88], sizes = [16, 2], strides = [1, 1]} : vector<16x200xf32> to vector<16x2xf32>
    %104 = arith.maximumf %102, %103 : vector<16x2xf32>
    %105 = vector.extract_strided_slice %2 {offsets = [0, 48], sizes = [16, 2], strides = [1, 1]} : vector<16x200xf32> to vector<16x2xf32>
    %106 = vector.extract_strided_slice %2 {offsets = [0, 50], sizes = [16, 2], strides = [1, 1]} : vector<16x200xf32> to vector<16x2xf32>
    %107 = arith.maximumf %105, %106 : vector<16x2xf32>
    %108 = vector.extract_strided_slice %2 {offsets = [0, 52], sizes = [16, 2], strides = [1, 1]} : vector<16x200xf32> to vector<16x2xf32>
    %109 = arith.maximumf %107, %108 : vector<16x2xf32>
    %110 = vector.extract_strided_slice %2 {offsets = [0, 68], sizes = [16, 2], strides = [1, 1]} : vector<16x200xf32> to vector<16x2xf32>
    %111 = arith.maximumf %109, %110 : vector<16x2xf32>
    %112 = vector.extract_strided_slice %2 {offsets = [0, 70], sizes = [16, 2], strides = [1, 1]} : vector<16x200xf32> to vector<16x2xf32>
    %113 = arith.maximumf %111, %112 : vector<16x2xf32>
    %114 = vector.extract_strided_slice %2 {offsets = [0, 72], sizes = [16, 2], strides = [1, 1]} : vector<16x200xf32> to vector<16x2xf32>
    %115 = arith.maximumf %113, %114 : vector<16x2xf32>
    %116 = vector.extract_strided_slice %2 {offsets = [0, 88], sizes = [16, 2], strides = [1, 1]} : vector<16x200xf32> to vector<16x2xf32>
    %117 = arith.maximumf %115, %116 : vector<16x2xf32>
    %118 = vector.extract_strided_slice %2 {offsets = [0, 90], sizes = [16, 2], strides = [1, 1]} : vector<16x200xf32> to vector<16x2xf32>
    %119 = arith.maximumf %117, %118 : vector<16x2xf32>
    %120 = vector.extract_strided_slice %2 {offsets = [0, 92], sizes = [16, 2], strides = [1, 1]} : vector<16x200xf32> to vector<16x2xf32>
    %121 = arith.maximumf %119, %120 : vector<16x2xf32>
    %122 = vector.extract_strided_slice %2 {offsets = [0, 52], sizes = [16, 2], strides = [1, 1]} : vector<16x200xf32> to vector<16x2xf32>
    %123 = vector.extract_strided_slice %2 {offsets = [0, 54], sizes = [16, 2], strides = [1, 1]} : vector<16x200xf32> to vector<16x2xf32>
    %124 = arith.maximumf %122, %123 : vector<16x2xf32>
    %125 = vector.extract_strided_slice %2 {offsets = [0, 56], sizes = [16, 2], strides = [1, 1]} : vector<16x200xf32> to vector<16x2xf32>
    %126 = arith.maximumf %124, %125 : vector<16x2xf32>
    %127 = vector.extract_strided_slice %2 {offsets = [0, 72], sizes = [16, 2], strides = [1, 1]} : vector<16x200xf32> to vector<16x2xf32>
    %128 = arith.maximumf %126, %127 : vector<16x2xf32>
    %129 = vector.extract_strided_slice %2 {offsets = [0, 74], sizes = [16, 2], strides = [1, 1]} : vector<16x200xf32> to vector<16x2xf32>
    %130 = arith.maximumf %128, %129 : vector<16x2xf32>
    %131 = vector.extract_strided_slice %2 {offsets = [0, 76], sizes = [16, 2], strides = [1, 1]} : vector<16x200xf32> to vector<16x2xf32>
    %132 = arith.maximumf %130, %131 : vector<16x2xf32>
    %133 = vector.extract_strided_slice %2 {offsets = [0, 92], sizes = [16, 2], strides = [1, 1]} : vector<16x200xf32> to vector<16x2xf32>
    %134 = arith.maximumf %132, %133 : vector<16x2xf32>
    %135 = vector.extract_strided_slice %2 {offsets = [0, 94], sizes = [16, 2], strides = [1, 1]} : vector<16x200xf32> to vector<16x2xf32>
    %136 = arith.maximumf %134, %135 : vector<16x2xf32>
    %137 = vector.extract_strided_slice %2 {offsets = [0, 96], sizes = [16, 2], strides = [1, 1]} : vector<16x200xf32> to vector<16x2xf32>
    %138 = arith.maximumf %136, %137 : vector<16x2xf32>
    %139 = vector.extract_strided_slice %2 {offsets = [0, 80], sizes = [16, 2], strides = [1, 1]} : vector<16x200xf32> to vector<16x2xf32>
    %140 = vector.extract_strided_slice %2 {offsets = [0, 82], sizes = [16, 2], strides = [1, 1]} : vector<16x200xf32> to vector<16x2xf32>
    %141 = arith.maximumf %139, %140 : vector<16x2xf32>
    %142 = vector.extract_strided_slice %2 {offsets = [0, 84], sizes = [16, 2], strides = [1, 1]} : vector<16x200xf32> to vector<16x2xf32>
    %143 = arith.maximumf %141, %142 : vector<16x2xf32>
    %144 = vector.extract_strided_slice %2 {offsets = [0, 100], sizes = [16, 2], strides = [1, 1]} : vector<16x200xf32> to vector<16x2xf32>
    %145 = arith.maximumf %143, %144 : vector<16x2xf32>
    %146 = vector.extract_strided_slice %2 {offsets = [0, 102], sizes = [16, 2], strides = [1, 1]} : vector<16x200xf32> to vector<16x2xf32>
    %147 = arith.maximumf %145, %146 : vector<16x2xf32>
    %148 = vector.extract_strided_slice %2 {offsets = [0, 104], sizes = [16, 2], strides = [1, 1]} : vector<16x200xf32> to vector<16x2xf32>
    %149 = arith.maximumf %147, %148 : vector<16x2xf32>
    %150 = vector.extract_strided_slice %2 {offsets = [0, 120], sizes = [16, 2], strides = [1, 1]} : vector<16x200xf32> to vector<16x2xf32>
    %151 = arith.maximumf %149, %150 : vector<16x2xf32>
    %152 = vector.extract_strided_slice %2 {offsets = [0, 122], sizes = [16, 2], strides = [1, 1]} : vector<16x200xf32> to vector<16x2xf32>
    %153 = arith.maximumf %151, %152 : vector<16x2xf32>
    %154 = vector.extract_strided_slice %2 {offsets = [0, 124], sizes = [16, 2], strides = [1, 1]} : vector<16x200xf32> to vector<16x2xf32>
    %155 = arith.maximumf %153, %154 : vector<16x2xf32>
    %156 = vector.extract_strided_slice %2 {offsets = [0, 84], sizes = [16, 2], strides = [1, 1]} : vector<16x200xf32> to vector<16x2xf32>
    %157 = vector.extract_strided_slice %2 {offsets = [0, 86], sizes = [16, 2], strides = [1, 1]} : vector<16x200xf32> to vector<16x2xf32>
    %158 = arith.maximumf %156, %157 : vector<16x2xf32>
    %159 = vector.extract_strided_slice %2 {offsets = [0, 88], sizes = [16, 2], strides = [1, 1]} : vector<16x200xf32> to vector<16x2xf32>
    %160 = arith.maximumf %158, %159 : vector<16x2xf32>
    %161 = vector.extract_strided_slice %2 {offsets = [0, 104], sizes = [16, 2], strides = [1, 1]} : vector<16x200xf32> to vector<16x2xf32>
    %162 = arith.maximumf %160, %161 : vector<16x2xf32>
    %163 = vector.extract_strided_slice %2 {offsets = [0, 106], sizes = [16, 2], strides = [1, 1]} : vector<16x200xf32> to vector<16x2xf32>
    %164 = arith.maximumf %162, %163 : vector<16x2xf32>
    %165 = vector.extract_strided_slice %2 {offsets = [0, 108], sizes = [16, 2], strides = [1, 1]} : vector<16x200xf32> to vector<16x2xf32>
    %166 = arith.maximumf %164, %165 : vector<16x2xf32>
    %167 = vector.extract_strided_slice %2 {offsets = [0, 124], sizes = [16, 2], strides = [1, 1]} : vector<16x200xf32> to vector<16x2xf32>
    %168 = arith.maximumf %166, %167 : vector<16x2xf32>
    %169 = vector.extract_strided_slice %2 {offsets = [0, 126], sizes = [16, 2], strides = [1, 1]} : vector<16x200xf32> to vector<16x2xf32>
    %170 = arith.maximumf %168, %169 : vector<16x2xf32>
    %171 = vector.extract_strided_slice %2 {offsets = [0, 128], sizes = [16, 2], strides = [1, 1]} : vector<16x200xf32> to vector<16x2xf32>
    %172 = arith.maximumf %170, %171 : vector<16x2xf32>
    %173 = vector.extract_strided_slice %2 {offsets = [0, 88], sizes = [16, 2], strides = [1, 1]} : vector<16x200xf32> to vector<16x2xf32>
    %174 = vector.extract_strided_slice %2 {offsets = [0, 90], sizes = [16, 2], strides = [1, 1]} : vector<16x200xf32> to vector<16x2xf32>
    %175 = arith.maximumf %173, %174 : vector<16x2xf32>
    %176 = vector.extract_strided_slice %2 {offsets = [0, 92], sizes = [16, 2], strides = [1, 1]} : vector<16x200xf32> to vector<16x2xf32>
    %177 = arith.maximumf %175, %176 : vector<16x2xf32>
    %178 = vector.extract_strided_slice %2 {offsets = [0, 108], sizes = [16, 2], strides = [1, 1]} : vector<16x200xf32> to vector<16x2xf32>
    %179 = arith.maximumf %177, %178 : vector<16x2xf32>
    %180 = vector.extract_strided_slice %2 {offsets = [0, 110], sizes = [16, 2], strides = [1, 1]} : vector<16x200xf32> to vector<16x2xf32>
    %181 = arith.maximumf %179, %180 : vector<16x2xf32>
    %182 = vector.extract_strided_slice %2 {offsets = [0, 112], sizes = [16, 2], strides = [1, 1]} : vector<16x200xf32> to vector<16x2xf32>
    %183 = arith.maximumf %181, %182 : vector<16x2xf32>
    %184 = vector.extract_strided_slice %2 {offsets = [0, 128], sizes = [16, 2], strides = [1, 1]} : vector<16x200xf32> to vector<16x2xf32>
    %185 = arith.maximumf %183, %184 : vector<16x2xf32>
    %186 = vector.extract_strided_slice %2 {offsets = [0, 130], sizes = [16, 2], strides = [1, 1]} : vector<16x200xf32> to vector<16x2xf32>
    %187 = arith.maximumf %185, %186 : vector<16x2xf32>
    %188 = vector.extract_strided_slice %2 {offsets = [0, 132], sizes = [16, 2], strides = [1, 1]} : vector<16x200xf32> to vector<16x2xf32>
    %189 = arith.maximumf %187, %188 : vector<16x2xf32>
    %190 = vector.extract_strided_slice %2 {offsets = [0, 92], sizes = [16, 2], strides = [1, 1]} : vector<16x200xf32> to vector<16x2xf32>
    %191 = vector.extract_strided_slice %2 {offsets = [0, 94], sizes = [16, 2], strides = [1, 1]} : vector<16x200xf32> to vector<16x2xf32>
    %192 = arith.maximumf %190, %191 : vector<16x2xf32>
    %193 = vector.extract_strided_slice %2 {offsets = [0, 96], sizes = [16, 2], strides = [1, 1]} : vector<16x200xf32> to vector<16x2xf32>
    %194 = arith.maximumf %192, %193 : vector<16x2xf32>
    %195 = vector.extract_strided_slice %2 {offsets = [0, 112], sizes = [16, 2], strides = [1, 1]} : vector<16x200xf32> to vector<16x2xf32>
    %196 = arith.maximumf %194, %195 : vector<16x2xf32>
    %197 = vector.extract_strided_slice %2 {offsets = [0, 114], sizes = [16, 2], strides = [1, 1]} : vector<16x200xf32> to vector<16x2xf32>
    %198 = arith.maximumf %196, %197 : vector<16x2xf32>
    %199 = vector.extract_strided_slice %2 {offsets = [0, 116], sizes = [16, 2], strides = [1, 1]} : vector<16x200xf32> to vector<16x2xf32>
    %200 = arith.maximumf %198, %199 : vector<16x2xf32>
    %201 = vector.extract_strided_slice %2 {offsets = [0, 132], sizes = [16, 2], strides = [1, 1]} : vector<16x200xf32> to vector<16x2xf32>
    %202 = arith.maximumf %200, %201 : vector<16x2xf32>
    %203 = vector.extract_strided_slice %2 {offsets = [0, 134], sizes = [16, 2], strides = [1, 1]} : vector<16x200xf32> to vector<16x2xf32>
    %204 = arith.maximumf %202, %203 : vector<16x2xf32>
    %205 = vector.extract_strided_slice %2 {offsets = [0, 136], sizes = [16, 2], strides = [1, 1]} : vector<16x200xf32> to vector<16x2xf32>
    %206 = arith.maximumf %204, %205 : vector<16x2xf32>
    %207 = vector.extract_strided_slice %2 {offsets = [0, 120], sizes = [16, 2], strides = [1, 1]} : vector<16x200xf32> to vector<16x2xf32>
    %208 = vector.extract_strided_slice %2 {offsets = [0, 122], sizes = [16, 2], strides = [1, 1]} : vector<16x200xf32> to vector<16x2xf32>
    %209 = arith.maximumf %207, %208 : vector<16x2xf32>
    %210 = vector.extract_strided_slice %2 {offsets = [0, 124], sizes = [16, 2], strides = [1, 1]} : vector<16x200xf32> to vector<16x2xf32>
    %211 = arith.maximumf %209, %210 : vector<16x2xf32>
    %212 = vector.extract_strided_slice %2 {offsets = [0, 140], sizes = [16, 2], strides = [1, 1]} : vector<16x200xf32> to vector<16x2xf32>
    %213 = arith.maximumf %211, %212 : vector<16x2xf32>
    %214 = vector.extract_strided_slice %2 {offsets = [0, 142], sizes = [16, 2], strides = [1, 1]} : vector<16x200xf32> to vector<16x2xf32>
    %215 = arith.maximumf %213, %214 : vector<16x2xf32>
    %216 = vector.extract_strided_slice %2 {offsets = [0, 144], sizes = [16, 2], strides = [1, 1]} : vector<16x200xf32> to vector<16x2xf32>
    %217 = arith.maximumf %215, %216 : vector<16x2xf32>
    %218 = vector.extract_strided_slice %2 {offsets = [0, 160], sizes = [16, 2], strides = [1, 1]} : vector<16x200xf32> to vector<16x2xf32>
    %219 = arith.maximumf %217, %218 : vector<16x2xf32>
    %220 = vector.extract_strided_slice %2 {offsets = [0, 162], sizes = [16, 2], strides = [1, 1]} : vector<16x200xf32> to vector<16x2xf32>
    %221 = arith.maximumf %219, %220 : vector<16x2xf32>
    %222 = vector.extract_strided_slice %2 {offsets = [0, 164], sizes = [16, 2], strides = [1, 1]} : vector<16x200xf32> to vector<16x2xf32>
    %223 = arith.maximumf %221, %222 : vector<16x2xf32>
    %224 = vector.extract_strided_slice %2 {offsets = [0, 124], sizes = [16, 2], strides = [1, 1]} : vector<16x200xf32> to vector<16x2xf32>
    %225 = vector.extract_strided_slice %2 {offsets = [0, 126], sizes = [16, 2], strides = [1, 1]} : vector<16x200xf32> to vector<16x2xf32>
    %226 = arith.maximumf %224, %225 : vector<16x2xf32>
    %227 = vector.extract_strided_slice %2 {offsets = [0, 128], sizes = [16, 2], strides = [1, 1]} : vector<16x200xf32> to vector<16x2xf32>
    %228 = arith.maximumf %226, %227 : vector<16x2xf32>
    %229 = vector.extract_strided_slice %2 {offsets = [0, 144], sizes = [16, 2], strides = [1, 1]} : vector<16x200xf32> to vector<16x2xf32>
    %230 = arith.maximumf %228, %229 : vector<16x2xf32>
    %231 = vector.extract_strided_slice %2 {offsets = [0, 146], sizes = [16, 2], strides = [1, 1]} : vector<16x200xf32> to vector<16x2xf32>
    %232 = arith.maximumf %230, %231 : vector<16x2xf32>
    %233 = vector.extract_strided_slice %2 {offsets = [0, 148], sizes = [16, 2], strides = [1, 1]} : vector<16x200xf32> to vector<16x2xf32>
    %234 = arith.maximumf %232, %233 : vector<16x2xf32>
    %235 = vector.extract_strided_slice %2 {offsets = [0, 164], sizes = [16, 2], strides = [1, 1]} : vector<16x200xf32> to vector<16x2xf32>
    %236 = arith.maximumf %234, %235 : vector<16x2xf32>
    %237 = vector.extract_strided_slice %2 {offsets = [0, 166], sizes = [16, 2], strides = [1, 1]} : vector<16x200xf32> to vector<16x2xf32>
    %238 = arith.maximumf %236, %237 : vector<16x2xf32>
    %239 = vector.extract_strided_slice %2 {offsets = [0, 168], sizes = [16, 2], strides = [1, 1]} : vector<16x200xf32> to vector<16x2xf32>
    %240 = arith.maximumf %238, %239 : vector<16x2xf32>
    %241 = vector.extract_strided_slice %2 {offsets = [0, 128], sizes = [16, 2], strides = [1, 1]} : vector<16x200xf32> to vector<16x2xf32>
    %242 = vector.extract_strided_slice %2 {offsets = [0, 130], sizes = [16, 2], strides = [1, 1]} : vector<16x200xf32> to vector<16x2xf32>
    %243 = arith.maximumf %241, %242 : vector<16x2xf32>
    %244 = vector.extract_strided_slice %2 {offsets = [0, 132], sizes = [16, 2], strides = [1, 1]} : vector<16x200xf32> to vector<16x2xf32>
    %245 = arith.maximumf %243, %244 : vector<16x2xf32>
    %246 = vector.extract_strided_slice %2 {offsets = [0, 148], sizes = [16, 2], strides = [1, 1]} : vector<16x200xf32> to vector<16x2xf32>
    %247 = arith.maximumf %245, %246 : vector<16x2xf32>
    %248 = vector.extract_strided_slice %2 {offsets = [0, 150], sizes = [16, 2], strides = [1, 1]} : vector<16x200xf32> to vector<16x2xf32>
    %249 = arith.maximumf %247, %248 : vector<16x2xf32>
    %250 = vector.extract_strided_slice %2 {offsets = [0, 152], sizes = [16, 2], strides = [1, 1]} : vector<16x200xf32> to vector<16x2xf32>
    %251 = arith.maximumf %249, %250 : vector<16x2xf32>
    %252 = vector.extract_strided_slice %2 {offsets = [0, 168], sizes = [16, 2], strides = [1, 1]} : vector<16x200xf32> to vector<16x2xf32>
    %253 = arith.maximumf %251, %252 : vector<16x2xf32>
    %254 = vector.extract_strided_slice %2 {offsets = [0, 170], sizes = [16, 2], strides = [1, 1]} : vector<16x200xf32> to vector<16x2xf32>
    %255 = arith.maximumf %253, %254 : vector<16x2xf32>
    %256 = vector.extract_strided_slice %2 {offsets = [0, 172], sizes = [16, 2], strides = [1, 1]} : vector<16x200xf32> to vector<16x2xf32>
    %257 = arith.maximumf %255, %256 : vector<16x2xf32>
    %258 = vector.extract_strided_slice %2 {offsets = [0, 132], sizes = [16, 2], strides = [1, 1]} : vector<16x200xf32> to vector<16x2xf32>
    %259 = vector.extract_strided_slice %2 {offsets = [0, 134], sizes = [16, 2], strides = [1, 1]} : vector<16x200xf32> to vector<16x2xf32>
    %260 = arith.maximumf %258, %259 : vector<16x2xf32>
    %261 = vector.extract_strided_slice %2 {offsets = [0, 136], sizes = [16, 2], strides = [1, 1]} : vector<16x200xf32> to vector<16x2xf32>
    %262 = arith.maximumf %260, %261 : vector<16x2xf32>
    %263 = vector.extract_strided_slice %2 {offsets = [0, 152], sizes = [16, 2], strides = [1, 1]} : vector<16x200xf32> to vector<16x2xf32>
    %264 = arith.maximumf %262, %263 : vector<16x2xf32>
    %265 = vector.extract_strided_slice %2 {offsets = [0, 154], sizes = [16, 2], strides = [1, 1]} : vector<16x200xf32> to vector<16x2xf32>
    %266 = arith.maximumf %264, %265 : vector<16x2xf32>
    %267 = vector.extract_strided_slice %2 {offsets = [0, 156], sizes = [16, 2], strides = [1, 1]} : vector<16x200xf32> to vector<16x2xf32>
    %268 = arith.maximumf %266, %267 : vector<16x2xf32>
    %269 = vector.extract_strided_slice %2 {offsets = [0, 172], sizes = [16, 2], strides = [1, 1]} : vector<16x200xf32> to vector<16x2xf32>
    %270 = arith.maximumf %268, %269 : vector<16x2xf32>
    %271 = vector.extract_strided_slice %2 {offsets = [0, 174], sizes = [16, 2], strides = [1, 1]} : vector<16x200xf32> to vector<16x2xf32>
    %272 = arith.maximumf %270, %271 : vector<16x2xf32>
    %273 = vector.extract_strided_slice %2 {offsets = [0, 176], sizes = [16, 2], strides = [1, 1]} : vector<16x200xf32> to vector<16x2xf32>
    %274 = arith.maximumf %272, %273 : vector<16x2xf32>
    %275 = tpu.concatenate %19, %36, %53, %70, %87, %104, %121, %138, %155, %172, %189, %206, %223, %240, %257, %274 in 0 : vector<16x2xf32>, vector<16x2xf32>, vector<16x2xf32>, vector<16x2xf32>, vector<16x2xf32>, vector<16x2xf32>, vector<16x2xf32>, vector<16x2xf32>, vector<16x2xf32>, vector<16x2xf32>, vector<16x2xf32>, vector<16x2xf32>, vector<16x2xf32>, vector<16x2xf32>, vector<16x2xf32>, vector<16x2xf32> -> vector<256x2xf32>
    %c0_3 = arith.constant 0 : index
    %c0_4 = arith.constant 0 : index
    %276 = vector.load %arg3[%c0_3, %c0_4] : memref<256x1xf32, #tpu.memory_space<vmem>>, vector<256x1xf32>
    %277 = vector.broadcast %276 : vector<256x1xf32> to vector<256x2xf32>
    %278 = arith.addf %275, %277 : vector<256x2xf32>
    %cst_5 = arith.constant 0.000000e+00 : f32
    %279 = vector.broadcast %cst_5 : f32 to vector<256x2xf32>
    %280 = arith.maximumf %278, %279 : vector<256x2xf32>
    %c0_6 = arith.constant 0 : index
    %c0_7 = arith.constant 0 : index
    %281 = vector.load %arg4[%c0_6, %c0_7] : memref<16x256xf32, #tpu.memory_space<vmem>>, vector<16x256xf32>
    %cst_8 = arith.constant dense<0.000000e+00> : vector<16x2xf32>
    %282 = tpu.matmul %281, %280, %cst_8 {dimension_numbers = #tpu.dot_dimension_numbers<[1], [0], [0], [1], [0, 0, 1, 1], [], []>} : vector<16x256xf32>, vector<256x2xf32>, vector<16x2xf32> -> vector<16x2xf32>
    %c0_9 = arith.constant 0 : index
    %c0_10 = arith.constant 0 : index
    %283 = vector.load %arg5[%c0_9, %c0_10] : memref<16x1xf32, #tpu.memory_space<vmem>>, vector<16x1xf32>
    %284 = vector.broadcast %283 : vector<16x1xf32> to vector<16x2xf32>
    %285 = arith.addf %282, %284 : vector<16x2xf32>
    %cst_11 = arith.constant 0.000000e+00 : f32
    %286 = vector.broadcast %cst_11 : f32 to vector<16x2xf32>
    %287 = arith.maximumf %285, %286 : vector<16x2xf32>
    %c0_12 = arith.constant 0 : index
    %c0_13 = arith.constant 0 : index
    %288 = vector.load %arg6[%c0_12, %c0_13] : memref<8x16xf32, #tpu.memory_space<vmem>>, vector<8x16xf32>
    %cst_14 = arith.constant dense<0.000000e+00> : vector<8x2xf32>
    %289 = tpu.matmul %288, %287, %cst_14 {dimension_numbers = #tpu.dot_dimension_numbers<[1], [0], [0], [1], [0, 0, 1, 1], [], []>} : vector<8x16xf32>, vector<16x2xf32>, vector<8x2xf32> -> vector<8x2xf32>
    %c0_15 = arith.constant 0 : index
    %c0_16 = arith.constant 0 : index
    %290 = vector.load %arg7[%c0_15, %c0_16] : memref<8x1xf32, #tpu.memory_space<vmem>>, vector<8x1xf32>
    %291 = vector.broadcast %290 : vector<8x1xf32> to vector<8x2xf32>
    %292 = arith.addf %289, %291 : vector<8x2xf32>
    %293 = vector.extract_strided_slice %292 {offsets = [0, 0], sizes = [2, 2], strides = [1, 1]} : vector<8x2xf32> to vector<2x2xf32>
    %c0_17 = arith.constant 0 : index
    %c0_18 = arith.constant 0 : index
    %294 = vector.load %arg8[%c0_17, %c0_18] : memref<2x2xf32, #tpu.memory_space<vmem>>, vector<2x2xf32>
    tpu.vector_store %arg8[%c0_17, %c0_18], %293 {strides = array<i32>} : memref<2x2xf32, #tpu.memory_space<vmem>>, vector<2x2xf32>,
    return
  }
  func.func @transform_0(%arg0: i32) -> (i32, i32) {
    %c0_i32 = arith.constant 0 : i32
    %c0_i32_0 = arith.constant 0 : i32
    return %c0_i32, %arg0 : i32, i32
  }
  func.func @transform_1(%arg0: i32) -> (i32, i32) {
    %c0_i32 = arith.constant 0 : i32
    %c0_i32_0 = arith.constant 0 : i32
    %c0_i32_1 = arith.constant 0 : i32
    return %c0_i32, %c0_i32_0 : i32, i32
  }
  func.func @transform_2(%arg0: i32) -> (i32, i32) {
    %c0_i32 = arith.constant 0 : i32
    %c0_i32_0 = arith.constant 0 : i32
    %c0_i32_1 = arith.constant 0 : i32
    return %c0_i32, %c0_i32_0 : i32, i32
  }
  func.func @transform_3(%arg0: i32) -> (i32, i32) {
    %c0_i32 = arith.constant 0 : i32
    %c0_i32_0 = arith.constant 0 : i32
    %c0_i32_1 = arith.constant 0 : i32
    return %c0_i32, %c0_i32_0 : i32, i32
  }
  func.func @transform_4(%arg0: i32) -> (i32, i32) {
    %c0_i32 = arith.constant 0 : i32
    %c0_i32_0 = arith.constant 0 : i32
    %c0_i32_1 = arith.constant 0 : i32
    return %c0_i32, %c0_i32_0 : i32, i32
  }
  func.func @transform_5(%arg0: i32) -> (i32, i32) {
    %c0_i32 = arith.constant 0 : i32
    %c0_i32_0 = arith.constant 0 : i32
    %c0_i32_1 = arith.constant 0 : i32
    return %c0_i32, %c0_i32_0 : i32, i32
  }
  func.func @transform_6(%arg0: i32) -> (i32, i32) {
    %c0_i32 = arith.constant 0 : i32
    %c0_i32_0 = arith.constant 0 : i32
    %c0_i32_1 = arith.constant 0 : i32
    return %c0_i32, %c0_i32_0 : i32, i32
  }
  func.func @transform_7(%arg0: i32) -> (i32, i32) {
    %c0_i32 = arith.constant 0 : i32
    %c0_i32_0 = arith.constant 0 : i32
    return %c0_i32, %arg0 : i32, i32
  }
}

</mosaic_0001>

<bundles_post_ra>
// kernel: net_forward.1
= control target key start
LH: loop header
LB: loop body
LE: loop exit
PB: predicated region body
PF: predicated region fallthrough
CT: control target
= control target key end

     0   :  { %vm43_vm0 = vcmask 1042432   ;;  %v948_v3 = vmov 0.0   ;;  %v949_v8 = vmov 0   ;;  %vm950_vm1 = vmmov 1   ;;  %s952_s15 = smov 126   ;;  %s953_s18 = smov 108   ;;  %s1418_s0 = inlined_call_operand.vmem [shape: f32[27,200], index: 0, kind: input, shape index: {}]   ;;  %s1419_s2 = inlined_call_operand.vmem [shape: f32[256,1], index: 2, kind: input, shape index: {}]   ;;  %s1420_s1 = inlined_call_operand.vmem [shape: f32[16,27], index: 1, kind: input, shape index: {}]   ;;  %s1421_s4 = inlined_call_operand.vmem [shape: f32[16,1], index: 4, kind: input, shape index: {}]   ;;  %s1422_s6 = inlined_call_operand.vmem [shape: f32[8,1], index: 6, kind: input, shape index: {}]   ;;  %s1423_s3 = inlined_call_operand.vmem [shape: f32[16,256], index: 3, kind: input, shape index: {}]   ;;  %s1424_s5 = inlined_call_operand.vmem [shape: f32[8,16], index: 5, kind: input, shape index: {}]   ;;  %s1425_s7 = inlined_call_operand.vmem [shape: f32[2,2], index: 7, kind: output, shape index: {}]  }
   0x1   :  { %v29_v0 = vld [vmem:[%s1418_s0 + $0x8] sm:$0xff]  ;;  %v31_v1 = vld [vmem:[%s1418_s0 + $0x18] sm:$0xff]  ;;  %v28_v2 = vld [vmem:[%s1418_s0] sm:$0xff]  ;;  %114 = vmatprep.mubr.f32.mxu0 %v948_v3  ;;  %946 = vset.pattern.permute.xlu0 %v949_v8  ;;  %vm36_vm3 = vcmask 220160   ;;  %s954_s21 = smov 106   ;;  %s956_s26 = smov 88  }
   0x2   :  { %v878_v4 = vpack.c.bf16 %v31_v1, %v29_v0  ;;  %v30_v5 = vld [vmem:[%s1418_s0 + $0x10] sm:$0xff]  ;;  %v33_v6 = vld [vmem:[%s1418_s0 + $0x28] sm:$0xff]  ;;  %v35_v7 = vld [vmem:[%s1418_s0 + $0x38] sm:$0x7]  ;;  %947 = vset.pattern.permute.xlu1 %v949_v8  ;;  %s957_s29 = smov 86   ;;  %s958_s9 = smov 84  }
   0x3   :  { %v880_v9 = vpack.c.bf16 %v30_v5, %v28_v2  ;;  %v882_v10 = vpack.c.bf16 %v35_v7, %v33_v6  ;;  %vm883_vm2 = vmpackc.low %vm43_vm0, %vm950_vm1  ;;  %v32_v11 = vld [vmem:[%s1418_s0 + $0x20] sm:$0xff]  ;;  %v34_v12 = vld [vmem:[%s1418_s0 + $0x30] sm:$0x7]  ;;  %s955_s0 = smov 104   ;;  %s961_s24 = smov 40   ;;  %vm970_vm4 = vmmov 0  }
   0x4   :  { %879 = vmatprep.subr.bf16.mxu0 %v878_v4  ;;  %v405_v13 = vld [vmem:[%s1419_s2 + $0x80] sm:$0xff]  ;;  %v885_v14 = vpack.c.bf16 %v34_v12, %v32_v11  ;;  %v406_v15 = vld [vmem:[%s1419_s2 + $0x88] sm:$0xff]  ;;  %v408_v19 = vld [vmem:[%s1419_s2 + $0x98] sm:$0xff]  ;;  %s962_s25 = smov 120   ;;  %s963_s27 = smov 36   ;;  %vm745_vm5 = vcmask 130048  }
   0x5   :  { %881 = vmatpush1.bf16.msra.mxu0 %v880_v9  ;;  %503 = vperm.xlu0 %946, %v405_v13   ;;  %v390_v16 = vld [vmem:[%s1419_s2 + $0x8] sm:$0xff]  ;;  %v389_v17 = vld [vmem:[%s1419_s2] sm:$0xff]  ;;  %v407_v20 = vld [vmem:[%s1419_s2 + $0x90] sm:$0xff]  ;;  %s964_s28 = smov 116   ;;  %s967_s30 = smov 80   ;;  %vm819_vm6 = vcmask 9216  }
   0x6   :  { %884 = vmatprep.subr.msk.bf16.mxu0 %vm883_vm2, %v882_v10  ;;  %508 = vperm.xlu1 %947, %v406_v15   ;;  %v26_v18 = vld [vmem:[%s1420_s1] sm:$0xff]  ;;  %v27_v21 = vld [vmem:[%s1420_s1 + $0x8] sm:$0xff]  ;;  %v392_v22 = vld [vmem:[%s1419_s2 + $0x18] sm:$0xff]  ;;  %s951_s1 = smov 124  }
   0x7   :  { %v391_v23 = vld [vmem:[%s1419_s2 + $0x10] sm:$0xff]  ;;  %v409_v24 = vld [vmem:[%s1419_s2 + $0xa0] sm:$0xff]  ;;  %v410_v35 = vld [vmem:[%s1419_s2 + $0xa8] sm:$0xff] }
   0x8   :  { %v393_v27 = vld [vmem:[%s1419_s2 + $0x20] sm:$0xff]  ;;  %v411_v30 = vld [vmem:[%s1419_s2 + $0xb0] sm:$0xff]  ;;  %v394_v36 = vld [vmem:[%s1419_s2 + $0x28] sm:$0xff] }
   0x9   :  { %887 = vmatpush1.bf16.msk.msra.mxu0 %vm883_vm2, %v885_v14  ;;  %428 = vperm.xlu0 %946, %v390_v16   ;;  %v395_v31 = vld [vmem:[%s1419_s2 + $0x30] sm:$0xff]  ;;  %v413_v32 = vld [vmem:[%s1419_s2 + $0xc0] sm:$0xff]  ;;  %v412_v37 = vld [vmem:[%s1419_s2 + $0xb8] sm:$0xff] }
   0xa   :  { %423 = vperm.xlu1 %947, %v389_v17   ;;  %v397_v33 = vld [vmem:[%s1419_s2 + $0x40] sm:$0xff]  ;;  %v415_v34 = vld [vmem:[%s1419_s2 + $0xd0] sm:$0xff]  ;;  %v396_v38 = vld [vmem:[%s1419_s2 + $0x38] sm:$0xff] }
   0xb   :  { %v414_v39 = vld [vmem:[%s1419_s2 + $0xc8] sm:$0xff]  ;;  %v416_v41 = vld [vmem:[%s1419_s2 + $0xd8] sm:$0xff]  ;;  %v399_v42 = vld [vmem:[%s1419_s2 + $0x50] sm:$0xff] }
   0xc   :  { %827 = vmatmul.mubr.msk.f32.vlgmr.msra.gmra.mrb[0].mxu0 %vm36_vm3, %v26_v18  ;;  %v398_v40 = vld [vmem:[%s1419_s2 + $0x48] sm:$0xff]  ;;  %v400_v43 = vld [vmem:[%s1419_s2 + $0x58] sm:$0xff]  ;;  %v417_v44 = vld [vmem:[%s1419_s2 + $0xe0] sm:$0xff] }
   0xd   :  { %120 = vmatprep.mubr.f32.mxu0 %v948_v3  ;;  %518 = vperm.xlu0 %946, %v408_v19   ;;  %v418_v46 = vld [vmem:[%s1419_s2 + $0xe8] sm:$0xff]  ;;  %v401_v47 = vld [vmem:[%s1419_s2 + $0x60] sm:$0xff]  ;;  %v419_v50 = vld [vmem:[%s1419_s2 + $0xf0] sm:$0xff] }
   0xe   :  { %513 = vperm.xlu1 %947, %v407_v20   ;;  %v402_v49 = vld [vmem:[%s1419_s2 + $0x68] sm:$0xff]  ;;  %v420_v53 = vld [vmem:[%s1419_s2 + $0xf8] sm:$0xff]  ;;  %v403_v54 = vld [vmem:[%s1419_s2 + $0x70] sm:$0xff] }
   0xf   :  { %v404_v56 = vld [vmem:[%s1419_s2 + $0x78] sm:$0xff]  ;;  %s959_s2 = smov 48  }
  0x10   :  { %828 = vmatmul.mubr.msk.f32.gmra.mrb[2].mxu0 %vm36_vm3, %v27_v21 }
  0x11   :  { %438 = vperm.xlu0 %946, %v392_v22   ;;  %875 = vmatprep.mubr.msk.f32.mxu0 %vm970_vm4, %v948_v3 }
  0x12   :  { %433 = vperm.xlu1 %947, %v391_v23  }
  0x16   :  { %523 = vperm.xlu1 %947, %v409_v24  }
  0x84   :  { %v1187_v45 = vpop.permute.xlu0 %503 }
  0x85   :  { %v1195_v48 = vpop.permute.xlu1 %508 }
  0x88   :  { %v1203_v51 = vpop.permute.xlu0 %428 }
  0x89   :  { %v1205_v52 = vpop.permute.xlu1 %423 }
  0x8c   :  { %v1213_v55 = vpop.permute.xlu0 %518 }
  0x8d   :  { %v1218_v57 = vpop.permute.xlu1 %513 }
  0x90   :  { %v1220_v58 = vpop.permute.xlu0 %438 }
  0x91   :  { %v1222_v59 = vpop.permute.xlu1 %433 }
  0x95   :  { %v1224_v61 = vpop.permute.xlu1 %523 }
  0xdf   :  { %v1071_v25 = vpop.f32.mrb[0].mxu0 }
  0xe0   :  { %137 = vrot.lane.b32.xlu1 %v1071_v25, %s951_s1  ;;  %129 = vrot.lane.b32.xlu0 %v1071_v25, %s952_s15  ;;  %v1077_v26 = vpop.f32.mrb[1].mxu0 }
  0xe3   :  { %v1082_v28 = vpop.f32.mrb[2].mxu0 }
  0xe4   :  { %443 = vperm.xlu1 %947, %v393_v27   ;;  %145 = vrot.lane.b32.xlu0 %v1071_v25, %s953_s18  ;;  %v1086_v29 = vpop.f32.mrb[3].mxu0 }
  0xe8   :  { %533 = vperm.xlu1 %947, %v411_v30   ;;  %153 = vrot.lane.b32.xlu0 %v1071_v25, %s954_s21 }
  0xec   :  { %453 = vperm.xlu1 %947, %v395_v31   ;;  %161 = vrot.lane.b32.xlu0 %v1071_v25, %s955_s0 }
  0xf0   :  { %543 = vperm.xlu1 %947, %v413_v32   ;;  %169 = vrot.lane.b32.xlu0 %v1071_v25, %s956_s26 }
  0xf4   :  { %463 = vperm.xlu1 %947, %v397_v33   ;;  %177 = vrot.lane.b32.xlu0 %v1071_v25, %s957_s29 }
  0xf8   :  { %553 = vperm.xlu1 %947, %v415_v34   ;;  %185 = vrot.lane.b32.xlu0 %v1071_v25, %s958_s9 }
  0xfc   :  { %195 = vrot.lane.b32.xlu0 %v1077_v26, %s958_s9  ;;  %139 = vrot.lane.b32.xlu1 %v1082_v28, %s951_s1 }
 0x100   :  { %203 = vrot.lane.b32.xlu0 %v1077_v26, %s956_s26  ;;  %147 = vrot.lane.b32.xlu1 %v1082_v28, %s953_s18 }
 0x104   :  { %211 = vrot.lane.b32.xlu0 %v1077_v26, %s957_s29  ;;  %155 = vrot.lane.b32.xlu1 %v1082_v28, %s954_s21 }
 0x108   :  { %221 = vrot.lane.b32.xlu0 %v1077_v26, %s953_s18  ;;  %163 = vrot.lane.b32.xlu1 %v1082_v28, %s955_s0 }
 0x10c   :  { %229 = vrot.lane.b32.xlu0 %v1077_v26, %s954_s21  ;;  %171 = vrot.lane.b32.xlu1 %v1082_v28, %s956_s26 }
 0x110   :  { %251 = vrot.lane.b32.xlu0 %v1077_v26, %s951_s1  ;;  %179 = vrot.lane.b32.xlu1 %v1082_v28, %s957_s29 }
 0x114   :  { %237 = vrot.lane.b32.xlu0 %v1077_v26, %s955_s0  ;;  %187 = vrot.lane.b32.xlu1 %v1082_v28, %s958_s9 }
 0x118   :  { %271 = vrot.lane.b32.xlu0 %v1077_v26, %s952_s15  ;;  %197 = vrot.lane.b32.xlu1 %v1086_v29, %s958_s9 }
 0x11c   :  { %131 = vrot.lane.b32.xlu0 %v1082_v28, %s952_s15  ;;  %205 = vrot.lane.b32.xlu1 %v1086_v29, %s956_s26 }
 0x120   :  { %528 = vperm.xlu0 %946, %v410_v35   ;;  %213 = vrot.lane.b32.xlu1 %v1086_v29, %s957_s29  ;;  %s966_s29 = smov 4  }
 0x124   :  { %448 = vperm.xlu0 %946, %v394_v36   ;;  %223 = vrot.lane.b32.xlu1 %v1086_v29, %s953_s18 }
 0x128   :  { %538 = vperm.xlu0 %946, %v412_v37   ;;  %231 = vrot.lane.b32.xlu1 %v1086_v29, %s954_s21  ;;  %s960_s21 = smov 44  }
 0x12c   :  { %458 = vperm.xlu0 %946, %v396_v38   ;;  %253 = vrot.lane.b32.xlu1 %v1086_v29, %s951_s1 }
 0x130   :  { %548 = vperm.xlu0 %946, %v414_v39   ;;  %239 = vrot.lane.b32.xlu1 %v1086_v29, %s955_s0  ;;  %s965_s0 = smov 8  }
 0x134   :  { %468 = vperm.xlu0 %946, %v398_v40   ;;  %273 = vrot.lane.b32.xlu1 %v1086_v29, %s952_s15  ;;  %s968_s15 = smov 76  }
 0x138   :  { %558 = vperm.xlu0 %946, %v416_v41   ;;  %473 = vperm.xlu1 %947, %v399_v42  }
 0x13c   :  { %478 = vperm.xlu0 %946, %v400_v43   ;;  %563 = vperm.xlu1 %947, %v417_v44  }
 0x140   :  { %568 = vperm.xlu0 %946, %v418_v46   ;;  %483 = vperm.xlu1 %947, %v401_v47  }
 0x144   :  { %488 = vperm.xlu0 %946, %v402_v49   ;;  %573 = vperm.xlu1 %947, %v419_v50  }
 0x148   :  { %578 = vperm.xlu0 %946, %v420_v53   ;;  %493 = vperm.xlu1 %947, %v403_v54  }
 0x14c   :  { %498 = vperm.xlu0 %946, %v404_v56  }
 0x152   :  { %v130_v60 = vpop.permute.xlu0 %129  ;;  %v138_v1 = vpop.permute.xlu1 %137 }
 0x153   :  { %v135_v63 = vmax.f32 %v1071_v25, %v130_v60 }
 0x155   :  { %v143_v2 = vmax.f32 %v135_v63, %v138_v1 }
 0x156   :  { %v146_v62 = vpop.permute.xlu0 %145 }
 0x157   :  { %v151_v5 = vmax.f32 %v143_v2, %v146_v62 }
 0x15a   :  { %v154_v0 = vpop.permute.xlu0 %153 }
 0x15b   :  { %v159_v7 = vmax.f32 %v151_v5, %v154_v0 }
 0x15e   :  { %v162_v4 = vpop.permute.xlu0 %161 }
 0x15f   :  { %v167_v9 = vmax.f32 %v159_v7, %v162_v4 }
 0x162   :  { %v170_v6 = vpop.permute.xlu0 %169 }
 0x163   :  { %v1227_v8 = vpop.permute.xlu1 %443  ;;  %v175_v11 = vmax.f32 %v167_v9, %v170_v6 }
 0x166   :  { %v178_v10 = vpop.permute.xlu0 %177 }
 0x167   :  { %v1229_v12 = vpop.permute.xlu1 %533  ;;  %v183_v13 = vmax.f32 %v175_v11, %v178_v10 }
 0x16a   :  { %v186_v14 = vpop.permute.xlu0 %185 }
 0x16b   :  { %v1231_v15 = vmax.f32 %v183_v13, %v186_v14  ;;  %v1233_v16 = vpop.permute.xlu1 %453 }
 0x16d   :  { %337 = vrot.lane.b32.xlu1 %v1231_v15, %s959_s2 }
 0x16e   :  { %v1237_v17 = vpop.permute.xlu0 %195 }
 0x16f   :  { %v1239_v18 = vpop.permute.xlu1 %543  ;;  %v201_v19 = vmax.f32 %v183_v13, %v1237_v17 }
 0x171   :  { %345 = vrot.lane.b32.xlu1 %v201_v19, %s960_s21 }
 0x172   :  { %v204_v20 = vpop.permute.xlu0 %203 }
 0x173   :  { %v1243_v21 = vpop.permute.xlu1 %463  ;;  %v209_v22 = vmax.f32 %v167_v9, %v204_v20 }
 0x175   :  { %295 = vrot.lane.b32.xlu1 %v1231_v15, %s951_s1 }
 0x176   :  { %v1247_v23 = vpop.permute.xlu0 %211 }
 0x177   :  { %v217_v24 = vmax.f32 %v209_v22, %v1247_v23  ;;  %v1250_v25 = vpop.permute.xlu1 %553 }
 0x179   :  { %v219_v27 = vmax.f32 %v217_v24, %v1237_v17 }
 0x17a   :  { %v222_v30 = vpop.permute.xlu0 %221 }
 0x17b   :  { %v140_v31 = vpop.permute.xlu1 %139  ;;  %353 = vrot.lane.b32.xlu1 %v219_v27, %s961_s24  ;;  %v227_v35 = vmax.f32 %v143_v2, %v222_v30 }
 0x17e   :  { %v230_v32 = vpop.permute.xlu0 %229 }
 0x17f   :  { %v148_v33 = vpop.permute.xlu1 %147  ;;  %301 = vrot.lane.b32.xlu1 %v1231_v15, %s962_s25  ;;  %v235_v38 = vmax.f32 %v227_v35, %v230_v32 }
 0x182   :  { %v252_v34 = vpop.permute.xlu0 %251 }
 0x183   :  { %v257_v36 = vmax.f32 %v135_v63, %v252_v34  ;;  %v156_v37 = vpop.permute.xlu1 %155  ;;  %359 = vrot.lane.b32.xlu1 %v219_v27, %s963_s27 }
 0x185   :  { %v259_v39 = vmax.f32 %v257_v36, %v222_v30 }
 0x186   :  { %v238_v40 = vpop.permute.xlu0 %237 }
 0x187   :  { %v261_v41 = vmax.f32 %v259_v39, %v230_v32  ;;  %v243_v42 = vmax.f32 %v235_v38, %v238_v40  ;;  %v164_v43 = vpop.permute.xlu1 %163  ;;  %307 = vrot.lane.b32.xlu1 %v1231_v15, %s964_s28 }
 0x189   :  { %v245_v44 = vmax.f32 %v243_v42, %v204_v20  ;;  %v263_v46 = vmax.f32 %v261_v41, %v238_v40 }
 0x18a   :  { %v272_v47 = vpop.permute.xlu0 %271 }
 0x18b   :  { %v277_v49 = vmax.f32 %v1077_v26, %v272_v47  ;;  %v172_v50 = vpop.permute.xlu1 %171  ;;  %v247_v53 = vmax.f32 %v245_v44, %v1247_v23  ;;  %v265_v54 = vmax.f32 %v263_v46, %v204_v20 }
 0x18d   :  { %v279_v56 = vmax.f32 %v277_v49, %v252_v34  ;;  %v249_v60 = vmax.f32 %v247_v53, %v1237_v17  ;;  %v267_v5 = vmax.f32 %v265_v54, %v1247_v23 }
 0x18e   :  { %v132_v62 = vpop.permute.xlu0 %131 }
 0x18f   :  { %v281_v63 = vmax.f32 %v279_v56, %v222_v30  ;;  %v136_v0 = vmax.f32 %v1082_v28, %v132_v62  ;;  %v180_v1 = vpop.permute.xlu1 %179  ;;  %367 = vrot.lane.b32.xlu1 %v249_v60, %s965_s0  ;;  %v269_v10 = vmax.f32 %v267_v5, %v1237_v17  ;;  %v581_v30 = vadd.f32 %v1205_v52, %v1231_v15 }
 0x191   :  { %v283_v2 = vmax.f32 %v281_v63, %v230_v32  ;;  %v144_v4 = vmax.f32 %v136_v0, %v140_v31  ;;  %v613_v34 = vmax.f32 %v581_v30, 0.0 }
 0x193   :  { %v152_v26 = vmax.f32 %v144_v4, %v148_v33  ;;  %v188_v6 = vpop.permute.xlu1 %187  ;;  %313 = vrot.lane.b32.xlu1 %v1231_v15, %s956_s26  ;;  %v285_v7 = vmax.f32 %v283_v2, %v238_v40  ;;  %v649_v40 = vld [vmem:[%s1421_s4] sm:$0xff] }
 0x195   :  { %v160_v9 = vmax.f32 %v152_v26, %v156_v37  ;;  %v287_v14 = vmax.f32 %v285_v7, %v204_v20 }
 0x197   :  { %v168_v11 = vmax.f32 %v160_v9, %v164_v43  ;;  %375 = vrot.lane.b32.xlu1 %v269_v10, %s966_s29  ;;  %v1269_v28 = vpop.permute.xlu1 %197  ;;  %v289_v27 = vmax.f32 %v287_v14, %v1247_v23 }
 0x199   :  { %v176_v13 = vmax.f32 %v168_v11, %v172_v50  ;;  %v291_v33 = vmax.f32 %v289_v27, %v1237_v17 }
 0x19b   :  { %v184_v19 = vmax.f32 %v176_v13, %v180_v1  ;;  %319 = vrot.lane.b32.xlu1 %v1231_v15, %s958_s9  ;;  %v1273_v22 = vpop.permute.xlu1 %205 }
 0x19c   :  { %v210_v35 = vmax.f32 %v168_v11, %v1273_v22 }
 0x19d   :  { %v1275_v24 = vmax.f32 %v184_v19, %v188_v6  ;;  %v202_v23 = vmax.f32 %v184_v19, %v1269_v28 }
 0x19f   :  { %339 = vrot.lane.b32.xlu0 %v1275_v24, %s959_s2  ;;  %v1282_v31 = vpop.permute.xlu0 %528  ;;  %325 = vrot.lane.b32.xlu1 %v1231_v15, %s967_s30  ;;  %v1286_v20 = vpop.permute.xlu1 %213  ;;  %v582_v32 = vadd.f32 %v1203_v51, %v1275_v24 }
 0x1a0   :  { %v218_v39 = vmax.f32 %v210_v35, %v1286_v20 }
 0x1a1   :  { %v614_v52 = vmax.f32 %v582_v32, 0.0 }
 0x1a2   :  { %v220_v41 = vmax.f32 %v218_v39, %v1269_v28 }
 0x1a3   :  { %v1293_v36 = vpop.permute.xlu0 %448  ;;  %383 = vrot.lane.b32.xlu1 %v291_v33, %s951_s1  ;;  %347 = vrot.lane.b32.xlu0 %v202_v23, %s960_s21  ;;  %v224_v37 = vpop.permute.xlu1 %223  ;;  %v1297_v38 = vpack.c.bf16 %v614_v52, %v613_v34 }
 0x1a4   :  { %v228_v44 = vmax.f32 %v144_v4, %v224_v37 }
 0x1a7   :  { %v1300_v51 = vpop.permute.xlu0 %538  ;;  %331 = vrot.lane.b32.xlu1 %v1231_v15, %s968_s15  ;;  %297 = vrot.lane.b32.xlu0 %v1275_v24, %s951_s1  ;;  %v232_v17 = vpop.permute.xlu1 %231  ;;  %v739_v15 = vld [vmem:[%s1422_s6] sm:$0xff] }
 0x1a8   :  { %v236_v47 = vmax.f32 %v228_v44, %v232_v17 }
 0x1ab   :  { %v1310_v42 = vpop.permute.xlu0 %458  ;;  %653 = vperm.xlu1 %947, %v649_v40   ;;  %355 = vrot.lane.b32.xlu0 %v220_v41, %s961_s24  ;;  %v254_v43 = vpop.permute.xlu1 %253 }
 0x1ac   :  { %v258_v46 = vmax.f32 %v136_v0, %v254_v43 }
 0x1ae   :  { %v260_v49 = vmax.f32 %v258_v46, %v224_v37 }
 0x1af   :  { %v1316_v50 = vpop.permute.xlu0 %548  ;;  %742 = vperm.xlu1 %947, %v739_v15   ;;  %303 = vrot.lane.b32.xlu0 %v1275_v24, %s962_s25  ;;  %v240_v53 = vpop.permute.xlu1 %239 }
 0x1b0   :  { %v244_v54 = vmax.f32 %v236_v47, %v240_v53  ;;  %v262_v56 = vmax.f32 %v260_v49, %v232_v17 }
 0x1b2   :  { %v246_v60 = vmax.f32 %v244_v54, %v1273_v22  ;;  %v264_v1 = vmax.f32 %v262_v56, %v240_v53 }
 0x1b3   :  { %v1321_v62 = vpop.permute.xlu0 %468  ;;  %361 = vrot.lane.b32.xlu0 %v220_v41, %s963_s27  ;;  %v274_v63 = vpop.permute.xlu1 %273 }
 0x1b4   :  { %v278_v0 = vmax.f32 %v1086_v29, %v274_v63  ;;  %v248_v2 = vmax.f32 %v246_v60, %v1286_v20  ;;  %v266_v6 = vmax.f32 %v264_v1, %v1273_v22 }
 0x1b6   :  { %v280_v4 = vmax.f32 %v278_v0, %v254_v43  ;;  %v250_v9 = vmax.f32 %v248_v2, %v1269_v28  ;;  %v268_v13 = vmax.f32 %v266_v6, %v1286_v20 }
 0x1b7   :  { %v1326_v5 = vpop.permute.xlu0 %558  ;;  %309 = vrot.lane.b32.xlu0 %v1275_v24, %s964_s28  ;;  %v1331_v7 = vpop.permute.xlu1 %473 }
 0x1b8   :  { %v282_v26 = vmax.f32 %v280_v4, %v224_v37  ;;  %v270_v30 = vmax.f32 %v268_v13, %v1269_v28 }
 0x1ba   :  { %v284_v10 = vmax.f32 %v282_v26, %v232_v17 }
 0x1bb   :  { %369 = vrot.lane.b32.xlu0 %v250_v9, %s965_s0  ;;  %v1335_v11 = vpop.permute.xlu0 %478  ;;  %v564_v19 = vpop.permute.xlu1 %563 }
 0x1bc   :  { %v286_v29 = vmax.f32 %v284_v10, %v240_v53  ;;  %v609_v32 = vadd.f32 %v564_v19, %v291_v33 }
 0x1be   :  { %v288_v14 = vmax.f32 %v286_v29, %v1273_v22  ;;  %v641_v35 = vmax.f32 %v609_v32, 0.0 }
 0x1bf   :  { %315 = vrot.lane.b32.xlu0 %v1275_v24, %s956_s26  ;;  %v569_v34 = vpop.permute.xlu0 %568  ;;  %v1360_v33 = vpop.permute.xlu1 %483 }
 0x1c0   :  { %v290_v27 = vmax.f32 %v288_v14, %v1286_v20  ;;  %v646_v20 = vld [vmem:[%s1423_s3 + $0x8] sm:$0xff] }
 0x1c1   :  { %725 = vmatprep.mubr.f32.mxu1 %v646_v20 }
 0x1c2   :  { %v292_v23 = vmax.f32 %v290_v27, %v1269_v28  ;;  %v650_v28 = vld [vmem:[%s1421_s4 + $0x8] sm:$0xff] }
 0x1c3   :  { %377 = vrot.lane.b32.xlu0 %v270_v30, %s966_s29  ;;  %v1362_v39 = vpop.permute.xlu1 %573  ;;  %v1366_v43 = vpop.permute.xlu0 %488 }
 0x1c4   :  { %v610_v52 = vadd.f32 %v569_v34, %v292_v23 }
 0x1c6   :  { %v642_v37 = vmax.f32 %v610_v52, 0.0 }
 0x1c7   :  { %321 = vrot.lane.b32.xlu0 %v1275_v24, %s958_s9  ;;  %v1364_v17 = vpop.permute.xlu1 %493  ;;  %v1368_v46 = vpop.permute.xlu0 %578 }
 0x1c8   :  { %v1347_v22 = vpack.c.bf16 %v642_v37, %v641_v35 }
 0x1cb   :  { %327 = vrot.lane.b32.xlu0 %v1275_v24, %s967_s30 }
 0x1cf   :  { %385 = vrot.lane.b32.xlu0 %v292_v23, %s951_s1 }
 0x1d3   :  { %333 = vrot.lane.b32.xlu0 %v1275_v24, %s968_s15  ;;  %v1370_v24 = vpop.permute.xlu0 %498 }
 0x1d7   :  { %658 = vperm.xlu0 %946, %v650_v28  }
 0x1df   :  { %v338_v40 = vpop.permute.xlu1 %337 }
 0x1e0   :  { %v597_v49 = vadd.f32 %v1187_v45, %v338_v40 }
 0x1e2   :  { %v629_v60 = vmax.f32 %v597_v49, 0.0 }
 0x1e3   :  { %v346_v41 = vpop.permute.xlu1 %345 }
 0x1e4   :  { %v599_v63 = vadd.f32 %v1218_v57, %v346_v41 }
 0x1e6   :  { %v631_v26 = vmax.f32 %v599_v63, 0.0 }
 0x1e7   :  { %v296_v44 = vpop.permute.xlu1 %295 }
 0x1e8   :  { %v583_v6 = vadd.f32 %v1222_v59, %v296_v44 }
 0x1ea   :  { %v615_v13 = vmax.f32 %v583_v6, 0.0 }
 0x1ed   :  { %v354_v15 = vpop.permute.xlu1 %353 }
 0x1ee   :  { %v601_v57 = vadd.f32 %v1224_v61, %v354_v15 }
 0x1f0   :  { %v633_v59 = vmax.f32 %v601_v57, 0.0 }
 0x1f1   :  { %v302_v47 = vpop.permute.xlu1 %301 }
 0x1f2   :  { %v585_v32 = vadd.f32 %v1227_v8, %v302_v47 }
 0x1f4   :  { %v617_v35 = vmax.f32 %v585_v32, 0.0 }
 0x1f5   :  { %v360_v56 = vpop.permute.xlu1 %359 }
 0x1f6   :  { %v603_v61 = vadd.f32 %v1229_v12, %v360_v56 }
 0x1f9   :  { %v308_v10 = vpop.permute.xlu1 %307 }
 0x1fa   :  { %v587_v41 = vadd.f32 %v1233_v16, %v308_v10 }
 0x1fc   :  { %v619_v49 = vmax.f32 %v587_v41, 0.0 }
 0x201   :  { %v368_v19 = vpop.permute.xlu1 %367 }
 0x211   :  { %v340_v53 = vpop.permute.xlu0 %339 }
 0x212   :  { %v598_v54 = vadd.f32 %v1195_v48, %v340_v53  ;;  %v605_v53 = vadd.f32 %v1239_v18, %v368_v19 }
 0x214   :  { %v630_v0 = vmax.f32 %v598_v54, 0.0  ;;  %v637_v63 = vmax.f32 %v605_v53, 0.0 }
 0x215   :  { %v348_v1 = vpop.permute.xlu0 %347 }
 0x216   :  { %v600_v2 = vadd.f32 %v1213_v55, %v348_v1  ;;  %v888_v4 = vpack.c.bf16 %v630_v0, %v629_v60 }
 0x218   :  { %v632_v9 = vmax.f32 %v600_v2, 0.0  ;;  %889 = vmatprep.subr.bf16.mxu1 %v888_v4 }
 0x219   :  { %v298_v29 = vpop.permute.xlu0 %297  ;;  %891 = vmatpush3.bf16.msra.mxu1 %v1297_v38 }
 0x21a   :  { %v892_v45 = vpack.c.bf16 %v632_v9, %v631_v26  ;;  %v584_v48 = vadd.f32 %v1220_v58, %v298_v29  ;;  %v314_v58 = vpop.permute.xlu1 %313 }
 0x21b   :  { %v589_v16 = vadd.f32 %v1243_v21, %v314_v58 }
 0x21c   :  { %v616_v14 = vmax.f32 %v584_v48, 0.0  ;;  %893 = vmatprep.subr.bf16.mxu1 %v892_v45 }
 0x21d   :  { %v356_v55 = vpop.permute.xlu0 %355 }
 0x21e   :  { %v894_v27 = vpack.c.bf16 %v616_v14, %v615_v13  ;;  %v602_v30 = vadd.f32 %v1282_v31, %v356_v55  ;;  %v635_v31 = vmax.f32 %v603_v61, 0.0  ;;  %v376_v44 = vpop.permute.xlu1 %375 }
 0x21f   :  { %v607_v26 = vadd.f32 %v1250_v25, %v376_v44 }
 0x220   :  { %v634_v23 = vmax.f32 %v602_v30, 0.0  ;;  %895 = vmatpush3.bf16.msra.mxu1 %v894_v27 }
 0x221   :  { %v304_v34 = vpop.permute.xlu0 %303  ;;  %v639_v29 = vmax.f32 %v607_v26, 0.0 }
 0x222   :  { %v896_v38 = vpack.c.bf16 %v634_v23, %v633_v59  ;;  %v586_v52 = vadd.f32 %v1293_v36, %v304_v34 }
 0x224   :  { %v618_v37 = vmax.f32 %v586_v52, 0.0  ;;  %897 = vmatprep.subr.bf16.mxu1 %v896_v38 }
 0x225   :  { %v362_v20 = vpop.permute.xlu0 %361 }
 0x226   :  { %v898_v28 = vpack.c.bf16 %v618_v37, %v617_v35  ;;  %v604_v40 = vadd.f32 %v1300_v51, %v362_v20  ;;  %v320_v51 = vpop.permute.xlu1 %319 }
 0x227   :  { %v591_v45 = vadd.f32 %v1331_v7, %v320_v51 }
 0x228   :  { %v636_v8 = vmax.f32 %v604_v40, 0.0  ;;  %899 = vmatpush3.bf16.msra.mxu1 %v898_v28 }
 0x229   :  { %v310_v15 = vpop.permute.xlu0 %309  ;;  %v623_v14 = vmax.f32 %v591_v45, 0.0 }
 0x22a   :  { %v900_v47 = vpack.c.bf16 %v636_v8, %v635_v31  ;;  %v588_v36 = vadd.f32 %v1310_v42, %v310_v15  ;;  %v621_v42 = vmax.f32 %v589_v16, 0.0  ;;  %v326_v6 = vpop.permute.xlu1 %325 }
 0x22b   :  { %v593_v25 = vadd.f32 %v1360_v33, %v326_v6 }
 0x22c   :  { %v620_v12 = vmax.f32 %v588_v36, 0.0  ;;  %901 = vmatprep.subr.bf16.mxu1 %v900_v47 }
 0x22d   :  { %v370_v54 = vpop.permute.xlu0 %369 }
 0x22e   :  { %v902_v56 = vpack.c.bf16 %v620_v12, %v619_v49  ;;  %v606_v60 = vadd.f32 %v1316_v50, %v370_v54  ;;  %v738_v54 = vld [vmem:[%s1424_s5] sm:$0xff] }
 0x230   :  { %v638_v0 = vmax.f32 %v606_v60, 0.0  ;;  %903 = vmatpush3.bf16.msra.mxu1 %v902_v56 }
 0x231   :  { %v316_v1 = vpop.permute.xlu0 %315 }
 0x232   :  { %v904_v2 = vpack.c.bf16 %v638_v0, %v637_v63  ;;  %v590_v4 = vadd.f32 %v1321_v62, %v316_v1  ;;  %v384_v62 = vpop.permute.xlu1 %383 }
 0x233   :  { %v611_v59 = vadd.f32 %v1362_v39, %v384_v62 }
 0x234   :  { %v622_v18 = vmax.f32 %v590_v4, 0.0  ;;  %905 = vmatprep.subr.bf16.mxu1 %v904_v2 }
 0x235   :  { %v378_v9 = vpop.permute.xlu0 %377  ;;  %v643_v38 = vmax.f32 %v611_v59, 0.0 }
 0x236   :  { %v906_v10 = vpack.c.bf16 %v622_v18, %v621_v42  ;;  %v608_v50 = vadd.f32 %v1326_v5, %v378_v9  ;;  %v625_v5 = vmax.f32 %v593_v25, 0.0  ;;  %v332_v32 = vpop.permute.xlu1 %331 }
 0x237   :  { %v595_v33 = vadd.f32 %v1364_v17, %v332_v32  ;;  %v647_v17 = vld [vmem:[%s1423_s3 + $0x10] sm:$0xff] }
 0x238   :  { %v640_v21 = vmax.f32 %v608_v50, 0.0  ;;  %907 = vmatpush3.bf16.msra.mxu1 %v906_v10 }
 0x239   :  { %v322_v48 = vpop.permute.xlu0 %321  ;;  %v627_v61 = vmax.f32 %v595_v33, 0.0 }
 0x23a   :  { %v908_v13 = vpack.c.bf16 %v640_v21, %v639_v29  ;;  %v592_v57 = vadd.f32 %v1335_v11, %v322_v48  ;;  %v654_v41 = vpop.permute.xlu1 %653 }
 0x23c   :  { %v624_v19 = vmax.f32 %v592_v57, 0.0  ;;  %909 = vmatprep.subr.bf16.mxu1 %v908_v13 }
 0x23d   :  { %v328_v55 = vpop.permute.xlu0 %327 }
 0x23e   :  { %v910_v27 = vpack.c.bf16 %v624_v19, %v623_v14  ;;  %v594_v30 = vadd.f32 %v1366_v43, %v328_v55  ;;  %v743_v3 = vpop.permute.xlu1 %742 }
 0x240   :  { %v626_v7 = vmax.f32 %v594_v30, 0.0  ;;  %911 = vmatpush3.bf16.msra.mxu1 %v910_v27 }
 0x241   :  { %v386_v23 = vpop.permute.xlu0 %385  ;;  %913 = vmatprep.subr.bf16.mxu1 %v1347_v22  ;;  %v645_v22 = vld [vmem:[%s1423_s3] sm:$0xff] }
 0x242   :  { %v914_v11 = vpack.c.bf16 %v626_v7, %v625_v5  ;;  %v612_v34 = vadd.f32 %v1368_v46, %v386_v23  ;;  %v648_v46 = vld [vmem:[%s1423_s3 + $0x18] sm:$0xff] }
 0x244   :  { %v644_v52 = vmax.f32 %v612_v34, 0.0  ;;  %915 = vmatpush3.bf16.msra.mxu1 %v914_v11 }
 0x245   :  { %v334_v58 = vpop.permute.xlu0 %333 }
 0x246   :  { %v916_v35 = vpack.c.bf16 %v644_v52, %v643_v38  ;;  %v596_v43 = vadd.f32 %v1370_v24, %v334_v58  ;;  %v969_v24 = vmov 0.0|0.0  }
 0x247   :  { %920 = vmatprep.subr.bf16.mxu0 %v969_v24 }
 0x248   :  { %v628_v39 = vmax.f32 %v596_v43, 0.0  ;;  %917 = vmatprep.subr.bf16.mxu1 %v916_v35 }
 0x24a   :  { %v918_v37 = vpack.c.bf16 %v628_v39, %v627_v61 }
 0x24c   :  { %919 = vmatpush3.bf16.msra.mxu1 %v918_v37 }
 0x24f   :  { %726 = vmatmul.mubr.f32.vlgmr.msra.gmra.mrb[0].mxu1 %v645_v22 }
 0x250   :  { %730 = vmatprep.mubr.f32.mxu1 %v648_v46 }
 0x253   :  { %731 = vmatmul.mubr.f32.gmra.mrb[2].mxu1 %v647_v17 }
 0x256   :  { %v659_v47 = vpop.permute.xlu0 %658 }
 0x322   :  { %v862_v20 = vpop.f32.mrb[0].mxu1 }
 0x323   :  { %v863_v28 = vpop.f32.mrb[1].mxu1 }
 0x324   :  { %v864_v40 = vadd.f32 %v863_v28, %v862_v20 }
 0x326   :  { %v865_v31 = vpop.f32.mrb[2].mxu1  ;;  %v728_v44 = vadd.f32 %v864_v40, %v654_v41 }
 0x327   :  { %v866_v8 = vpop.f32.mrb[3].mxu1 }
 0x328   :  { %v867_v15 = vadd.f32 %v866_v8, %v865_v31  ;;  %v736_v49 = vmax.f32 %v728_v44, 0.0 }
 0x32a   :  { %v733_v36 = vadd.f32 %v867_v15, %v659_v47 }
 0x32c   :  { %v737_v53 = vmax.f32 %v733_v36, 0.0 }
 0x32e   :  { %v921_v12 = vpack.c.bf16 %v737_v53, %v736_v49 }
 0x330   :  { %922 = vmatpush3.bf16.msra.mxu0 %v921_v12 }
 0x333   :  { %876 = vmatmul.mubr.msk.f32.vlgmr.msra.gmra.mrb[4].mxu0 %vm745_vm5, %v738_v54 }
 0x406   :  { %v815_v56 = vpop.f32.mrb[4].mxu0 }
 0x407   :  { %v816_v60 = vadd.f32 %v815_v56, %v743_v3  ;;  %v877_v51 = vpop.f32.mrb[5].mxu0 }
 0x409   :  { %820 = vst.msk [vmem:[%s1425_s7] sm:$0x3] %vm819_vm6, %v816_v60 }

</bundles_post_ra>
